<compile_context>
chip_gen: v7x
topology: tpu7x:2x2x1
jax: 0.10.0
libtpu: 0.0.40
codegen_flags: <defaults>
</compile_context>

<pallas_src>
import jax
import jax.numpy as jnp
from jax.experimental import pallas as pl
from jax.experimental.pallas import tpu as pltpu

INPUT_SIZE = 7
IN_PAD = 8          # pad input features 7 -> 8 (sublane/32B alignment)
HIDDEN_SIZE = 128
OUTPUT_SIZE = 6
OUT_PAD = 8         # pad output 6 -> 8 (legal block: last dim == array dim)


def _round_up(n, m):
    return ((n + m - 1) // m) * m


def _batch_axis_semantics():
    """CORE_PARALLEL on v7x (2 TCs/chip); plain parallel elsewhere."""
    try:
        kind = jax.devices()[0].device_kind.lower()
    except Exception:  # pragma: no cover - defensive
        kind = ""
    if "v7" in kind or "7x" in kind:
        return (pltpu.CORE_PARALLEL,)
    return (pltpu.PARALLEL,)


def mlp_kernel(x_ref, w1_ref, b1_ref, w2_ref, b2_ref,
               w3_ref, b3_ref, w4_ref, b4_ref, o_ref):
    # Layer 1: Linear(8-padded -> 128) + ReLU.  x is pre-cast to the weight
    # dtype in the wrapper, so the astype below is a no-op there; matmuls
    # accumulate in f32 regardless of weight dtype.
    h = jnp.dot(x_ref[...].astype(w1_ref.dtype), w1_ref[...],
                preferred_element_type=jnp.float32)
    h = jnp.maximum(h + b1_ref[...], 0.0)
    # Layer 2: Linear(128 -> 128) + ReLU
    h = jnp.dot(h.astype(w2_ref.dtype), w2_ref[...],
                preferred_element_type=jnp.float32)
    h = jnp.maximum(h + b2_ref[...], 0.0)
    # Layer 3: Linear(128 -> 128) + ReLU
    h = jnp.dot(h.astype(w3_ref.dtype), w3_ref[...],
                preferred_element_type=jnp.float32)
    h = jnp.maximum(h + b3_ref[...], 0.0)
    # Output layer: Linear(128 -> 8-padded), no activation
    out = jnp.dot(h.astype(w4_ref.dtype), w4_ref[...],
                  preferred_element_type=jnp.float32)
    o_ref[...] = (out + b4_ref[...]).astype(o_ref.dtype)


def mlp_forward(x, params, *, block_b=2048, param_dtype=jnp.float32,
                out_dtype=jnp.float32):
    """Fused MLP forward.

    block_b:     batch tile (rounded to a multiple of 128).  2048-8192 is a
                 good range; the per-grid-step fixed cost dominates this tiny
                 MLP, so bigger tiles (fewer steps) are faster.
    param_dtype: matmul weight/activation dtype (jnp.bfloat16 for MXU-native
                 throughput on v6e/v7x; accumulation and bias/ReLU stay f32).
    out_dtype:   stored output dtype (jnp.bfloat16 halves the writeback if
                 callers don't need f32).
    """
    (w1, b1), (w2, b2), (w3, b3), (w4, b4) = params
    B = x.shape[0]

    # Batch tile: multiple of 128 (full MXU M passes), capped at block_b.
    block_b = max(128, _round_up(block_b, 128))
    Bt = min(block_b, _round_up(B, 128))
    num_tiles = pl.cdiv(B, Bt)
    Bp = num_tiles * Bt

    # Pad batch (tail rows discarded below) and input features 7 -> 8.
    x = jnp.pad(x, ((0, Bp - B), (0, IN_PAD - INPUT_SIZE)))

    # Pad layer-1 weight with a zero input row; pad output layer 6 -> 8 cols.
    w1p = jnp.pad(w1, ((0, IN_PAD - INPUT_SIZE), (0, 0)))
    w4p = jnp.pad(w4, ((0, 0), (0, OUT_PAD - OUTPUT_SIZE)))
    b4p = jnp.pad(b4, ((0, 0), (0, OUT_PAD - OUTPUT_SIZE)))

    # Optional bf16 storage for MXU throughput (biases stay f32); pre-cast x
    # so the in-kernel astype on the x tile is a no-op.
    w1c, w2c, w3c, w4c = (w.astype(param_dtype) for w in (w1p, w2, w3, w4p))
    xc = x.astype(param_dtype) if x.dtype != param_dtype else x

    batch_map = lambda i: (i, 0)   # x / out tiles advance with the grid
    const_map = lambda i: (0, 0)   # weights & biases stay resident in VMEM

    out = pl.pallas_call(
        mlp_kernel,
        out_shape=jax.ShapeDtypeStruct((Bp, OUT_PAD), out_dtype),
        grid=(num_tiles,),
        in_specs=[
            pl.BlockSpec((Bt, IN_PAD), batch_map),                 # x tile
            pl.BlockSpec((IN_PAD, HIDDEN_SIZE), const_map),        # w1 (padded)
            pl.BlockSpec((1, HIDDEN_SIZE), const_map),             # b1
            pl.BlockSpec((HIDDEN_SIZE, HIDDEN_SIZE), const_map),   # w2
            pl.BlockSpec((1, HIDDEN_SIZE), const_map),             # b2
            pl.BlockSpec((HIDDEN_SIZE, HIDDEN_SIZE), const_map),   # w3
            pl.BlockSpec((1, HIDDEN_SIZE), const_map),             # b3
            pl.BlockSpec((HIDDEN_SIZE, OUT_PAD), const_map),       # w4 (padded)
            pl.BlockSpec((1, OUT_PAD), const_map),                 # b4 (padded)
        ],
        out_specs=pl.BlockSpec((Bt, OUT_PAD), batch_map),
        compiler_params=pltpu.CompilerParams(
            dimension_semantics=_batch_axis_semantics(),
        ),
    )(xc, w1c, b1, w2c, b2, w3c, b3, w4c, b4p)

    return out[:B, :OUTPUT_SIZE]


def init_linear_params(key, fan_in, fan_out):
    """Deterministic init mimicking PyTorch nn.Linear (uniform +/- 1/sqrt(fan_in)).

    Returns weight of shape (fan_in, fan_out) (already transposed for x @ W)
    and bias of shape (1, fan_out) (2-D for TPU-friendly broadcasting).
    """
    kw, kb = jax.random.split(key)
    bound = 1.0 / jnp.sqrt(jnp.float32(fan_in))
    w = jax.random.uniform(kw, (fan_in, fan_out), jnp.float32, -bound, bound)
    b = jax.random.uniform(kb, (1, fan_out), jnp.float32, -bound, bound)
    return w, b


def reference_forward(x, params):
    h = x
    for i, (w, b) in enumerate(params):
        h = h @ w + b
        if i < len(params) - 1:
            h = jnp.maximum(h, 0.0)
    return h


if __name__ == "__main__":
    key = jax.random.PRNGKey(0)
    k_x, k1, k2, k3, k4 = jax.random.split(key, 5)

    params = (
        init_linear_params(k1, INPUT_SIZE, HIDDEN_SIZE),
        init_linear_params(k2, HIDDEN_SIZE, HIDDEN_SIZE),
        init_linear_params(k3, HIDDEN_SIZE, HIDDEN_SIZE),
        init_linear_params(k4, HIDDEN_SIZE, OUTPUT_SIZE),
    )

    # Small batch: single-tile path (batch padded up to one 128-row tile).
    x_small = jax.random.normal(k_x, (8, INPUT_SIZE), jnp.float32)
    out_small = jax.block_until_ready(mlp_forward(x_small, params))
    ref_small = reference_forward(x_small, params)
    assert out_small.shape == (8, OUTPUT_SIZE), out_small.shape
    assert jnp.allclose(out_small, ref_small, atol=1e-4, rtol=1e-4), \
        "small-batch mismatch vs JAX reference"

    # Ragged batch with a small tile: exercises the multi-tile pipelined grid.
    x_big = jax.random.normal(k_x, (300, INPUT_SIZE), jnp.float32)
    ref_big = reference_forward(x_big, params)
    out_big = jax.block_until_ready(mlp_forward(x_big, params, block_b=128))
    assert out_big.shape == (300, OUTPUT_SIZE), out_big.shape
    assert jnp.allclose(out_big, ref_big, atol=1e-4, rtol=1e-4), \
        "tiled-batch mismatch vs JAX reference"

    # Larger batch with the default 2048-row tile (multi-tile + tail padding).
    x_huge = jax.random.normal(k_x, (3000, INPUT_SIZE), jnp.float32)
    out_huge = jax.block_until_ready(mlp_forward(x_huge, params))
    ref_huge = reference_forward(x_huge, params)
    assert out_huge.shape == (3000, OUTPUT_SIZE), out_huge.shape
    assert jnp.allclose(out_huge, ref_huge, atol=1e-4, rtol=1e-4), \
        "large-batch mismatch vs JAX reference"

    # bf16 weights/activations (MXU-native on v6e/v7x); f32 accumulation keeps
    # the drift small, so compare against the f32 reference at a loose tol.
    out_bf16 = jax.block_until_ready(
        mlp_forward(x_big, params, param_dtype=jnp.bfloat16))
    assert out_bf16.shape == (300, OUTPUT_SIZE), out_bf16.shape
    assert jnp.allclose(out_bf16, ref_big, atol=5e-2, rtol=5e-2), \
        "bf16-weight path drifted too far from f32 reference"

    print("KERNEL_OK")
</pallas_src>

<mosaic_0001>
module attributes {stable_mosaic.version = 11 : i64} {
  func.func @mlp_kernel(%arg0: i32, %arg1: memref<128x8xf32, #tpu.memory_space<vmem>>, %arg2: memref<8x128xf32, #tpu.memory_space<vmem>>, %arg3: memref<1x128xf32, #tpu.memory_space<vmem>>, %arg4: memref<128x128xf32, #tpu.memory_space<vmem>>, %arg5: memref<1x128xf32, #tpu.memory_space<vmem>>, %arg6: memref<128x128xf32, #tpu.memory_space<vmem>>, %arg7: memref<1x128xf32, #tpu.memory_space<vmem>>, %arg8: memref<128x8xf32, #tpu.memory_space<vmem>>, %arg9: memref<1x8xf32, #tpu.memory_space<vmem>>, %arg10: memref<128x8xf32, #tpu.memory_space<vmem>>) attributes {dimension_semantics = [#tpu.dimension_semantics<parallel>], iteration_bounds = array<i64: 1>, scalar_prefetch = 0 : i64, scratch_operands = 0 : i64, tpu.core_type = #tpu.core_type<tc>, window_params = [{transform_indices = @transform_0, window_bounds = array<i64: 128, 8>}, {pipeline_mode = #tpu.pipeline_mode<synchronous>, transform_indices = @transform_1, window_bounds = array<i64: 8, 128>}, {pipeline_mode = #tpu.pipeline_mode<synchronous>, transform_indices = @transform_2, window_bounds = array<i64: 1, 128>}, {pipeline_mode = #tpu.pipeline_mode<synchronous>, transform_indices = @transform_3, window_bounds = array<i64: 128, 128>}, {pipeline_mode = #tpu.pipeline_mode<synchronous>, transform_indices = @transform_4, window_bounds = array<i64: 1, 128>}, {pipeline_mode = #tpu.pipeline_mode<synchronous>, transform_indices = @transform_5, window_bounds = array<i64: 128, 128>}, {pipeline_mode = #tpu.pipeline_mode<synchronous>, transform_indices = @transform_6, window_bounds = array<i64: 1, 128>}, {pipeline_mode = #tpu.pipeline_mode<synchronous>, transform_indices = @transform_7, window_bounds = array<i64: 128, 8>}, {pipeline_mode = #tpu.pipeline_mode<synchronous>, transform_indices = @transform_8, window_bounds = array<i64: 1, 8>}, {transform_indices = @transform_9, window_bounds = array<i64: 128, 8>}]} {
    %c0 = arith.constant 0 : index
    %c0_0 = arith.constant 0 : index
    %0 = vector.load %arg1[%c0, %c0_0] : memref<128x8xf32, #tpu.memory_space<vmem>>, vector<128x8xf32>
    %c0_1 = arith.constant 0 : index
    %c0_2 = arith.constant 0 : index
    %1 = vector.load %arg2[%c0_1, %c0_2] : memref<8x128xf32, #tpu.memory_space<vmem>>, vector<8x128xf32>
    %cst = arith.constant dense<0.000000e+00> : vector<128x128xf32>
    %2 = tpu.matmul %0, %1, %cst {dimension_numbers = #tpu.dot_dimension_numbers<[1], [0], [0], [1], [0, 0, 1, 1], [], []>} : vector<128x8xf32>, vector<8x128xf32>, vector<128x128xf32> -> vector<128x128xf32>
    %c0_3 = arith.constant 0 : index
    %c0_4 = arith.constant 0 : index
    %3 = vector.load %arg3[%c0_3, %c0_4] : memref<1x128xf32, #tpu.memory_space<vmem>>, vector<1x128xf32>
    %4 = vector.broadcast %3 : vector<1x128xf32> to vector<128x128xf32>
    %5 = arith.addf %2, %4 : vector<128x128xf32>
    %cst_5 = arith.constant 0.000000e+00 : f32
    %6 = vector.broadcast %cst_5 : f32 to vector<128x128xf32>
    %7 = arith.maximumf %5, %6 : vector<128x128xf32>
    %c0_6 = arith.constant 0 : index
    %c0_7 = arith.constant 0 : index
    %8 = vector.load %arg4[%c0_6, %c0_7] : memref<128x128xf32, #tpu.memory_space<vmem>>, vector<128x128xf32>
    %cst_8 = arith.constant dense<0.000000e+00> : vector<128x128xf32>
    %9 = tpu.matmul %7, %8, %cst_8 {dimension_numbers = #tpu.dot_dimension_numbers<[1], [0], [0], [1], [0, 0, 1, 1], [], []>} : vector<128x128xf32>, vector<128x128xf32>, vector<128x128xf32> -> vector<128x128xf32>
    %c0_9 = arith.constant 0 : index
    %c0_10 = arith.constant 0 : index
    %10 = vector.load %arg5[%c0_9, %c0_10] : memref<1x128xf32, #tpu.memory_space<vmem>>, vector<1x128xf32>
    %11 = vector.broadcast %10 : vector<1x128xf32> to vector<128x128xf32>
    %12 = arith.addf %9, %11 : vector<128x128xf32>
    %cst_11 = arith.constant 0.000000e+00 : f32
    %13 = vector.broadcast %cst_11 : f32 to vector<128x128xf32>
    %14 = arith.maximumf %12, %13 : vector<128x128xf32>
    %c0_12 = arith.constant 0 : index
    %c0_13 = arith.constant 0 : index
    %15 = vector.load %arg6[%c0_12, %c0_13] : memref<128x128xf32, #tpu.memory_space<vmem>>, vector<128x128xf32>
    %cst_14 = arith.constant dense<0.000000e+00> : vector<128x128xf32>
    %16 = tpu.matmul %14, %15, %cst_14 {dimension_numbers = #tpu.dot_dimension_numbers<[1], [0], [0], [1], [0, 0, 1, 1], [], []>} : vector<128x128xf32>, vector<128x128xf32>, vector<128x128xf32> -> vector<128x128xf32>
    %c0_15 = arith.constant 0 : index
    %c0_16 = arith.constant 0 : index
    %17 = vector.load %arg7[%c0_15, %c0_16] : memref<1x128xf32, #tpu.memory_space<vmem>>, vector<1x128xf32>
    %18 = vector.broadcast %17 : vector<1x128xf32> to vector<128x128xf32>
    %19 = arith.addf %16, %18 : vector<128x128xf32>
    %cst_17 = arith.constant 0.000000e+00 : f32
    %20 = vector.broadcast %cst_17 : f32 to vector<128x128xf32>
    %21 = arith.maximumf %19, %20 : vector<128x128xf32>
    %c0_18 = arith.constant 0 : index
    %c0_19 = arith.constant 0 : index
    %22 = vector.load %arg8[%c0_18, %c0_19] : memref<128x8xf32, #tpu.memory_space<vmem>>, vector<128x8xf32>
    %cst_20 = arith.constant dense<0.000000e+00> : vector<128x8xf32>
    %23 = tpu.matmul %21, %22, %cst_20 {dimension_numbers = #tpu.dot_dimension_numbers<[1], [0], [0], [1], [0, 0, 1, 1], [], []>} : vector<128x128xf32>, vector<128x8xf32>, vector<128x8xf32> -> vector<128x8xf32>
    %c0_21 = arith.constant 0 : index
    %c0_22 = arith.constant 0 : index
    %24 = vector.load %arg9[%c0_21, %c0_22] : memref<1x8xf32, #tpu.memory_space<vmem>>, vector<1x8xf32>
    %25 = vector.broadcast %24 : vector<1x8xf32> to vector<128x8xf32>
    %26 = arith.addf %23, %25 : vector<128x8xf32>
    %c0_23 = arith.constant 0 : index
    %c0_24 = arith.constant 0 : index
    %27 = vector.load %arg10[%c0_23, %c0_24] : memref<128x8xf32, #tpu.memory_space<vmem>>, vector<128x8xf32>
    tpu.vector_store %arg10[%c0_23, %c0_24], %26 {strides = array<i32>} : memref<128x8xf32, #tpu.memory_space<vmem>>, vector<128x8xf32>,
    return
  }
  func.func @transform_0(%arg0: i32) -> (i32, i32) {
    %c0_i32 = arith.constant 0 : i32
    %c0_i32_0 = arith.constant 0 : i32
    return %arg0, %c0_i32 : i32, i32
  }
  func.func @transform_1(%arg0: i32) -> (i32, i32) {
    %c0_i32 = arith.constant 0 : i32
    %c0_i32_0 = arith.constant 0 : i32
    %c0_i32_1 = arith.constant 0 : i32
    return %c0_i32, %c0_i32_0 : i32, i32
  }
  func.func @transform_2(%arg0: i32) -> (i32, i32) {
    %c0_i32 = arith.constant 0 : i32
    %c0_i32_0 = arith.constant 0 : i32
    %c0_i32_1 = arith.constant 0 : i32
    return %c0_i32, %c0_i32_0 : i32, i32
  }
  func.func @transform_3(%arg0: i32) -> (i32, i32) {
    %c0_i32 = arith.constant 0 : i32
    %c0_i32_0 = arith.constant 0 : i32
    %c0_i32_1 = arith.constant 0 : i32
    return %c0_i32, %c0_i32_0 : i32, i32
  }
  func.func @transform_4(%arg0: i32) -> (i32, i32) {
    %c0_i32 = arith.constant 0 : i32
    %c0_i32_0 = arith.constant 0 : i32
    %c0_i32_1 = arith.constant 0 : i32
    return %c0_i32, %c0_i32_0 : i32, i32
  }
  func.func @transform_5(%arg0: i32) -> (i32, i32) {
    %c0_i32 = arith.constant 0 : i32
    %c0_i32_0 = arith.constant 0 : i32
    %c0_i32_1 = arith.constant 0 : i32
    return %c0_i32, %c0_i32_0 : i32, i32
  }
  func.func @transform_6(%arg0: i32) -> (i32, i32) {
    %c0_i32 = arith.constant 0 : i32
    %c0_i32_0 = arith.constant 0 : i32
    %c0_i32_1 = arith.constant 0 : i32
    return %c0_i32, %c0_i32_0 : i32, i32
  }
  func.func @transform_7(%arg0: i32) -> (i32, i32) {
    %c0_i32 = arith.constant 0 : i32
    %c0_i32_0 = arith.constant 0 : i32
    %c0_i32_1 = arith.constant 0 : i32
    return %c0_i32, %c0_i32_0 : i32, i32
  }
  func.func @transform_8(%arg0: i32) -> (i32, i32) {
    %c0_i32 = arith.constant 0 : i32
    %c0_i32_0 = arith.constant 0 : i32
    %c0_i32_1 = arith.constant 0 : i32
    return %c0_i32, %c0_i32_0 : i32, i32
  }
  func.func @transform_9(%arg0: i32) -> (i32, i32) {
    %c0_i32 = arith.constant 0 : i32
    %c0_i32_0 = arith.constant 0 : i32
    return %arg0, %c0_i32 : i32, i32
  }
}

</mosaic_0001>

<bundles_post_ra>
// kernel: tpu_custom_call.1
= control target key start
LH: loop header
LB: loop body
LE: loop exit
PB: predicated region body
PF: predicated region fallthrough
CT: control target
= control target key end

     0   :  { %vm56_vm0 = vcmask 64512   ;;  %s1640_s1 = inlined_call_operand.vmem [shape: f32[8,128], index: 1, kind: input, shape index: {}]   ;;  %s1641_s0 = inlined_call_operand.vmem [shape: f32[128,8], index: 0, kind: input, shape index: {}]   ;;  %s1642_s3 = inlined_call_operand.vmem [shape: f32[128,128], index: 3, kind: input, shape index: {}]   ;;  %s1643_s5 = inlined_call_operand.vmem [shape: f32[128,128], index: 5, kind: input, shape index: {}]   ;;  %s1644_s2 = inlined_call_operand.vmem [shape: f32[1,128], index: 2, kind: input, shape index: {}]   ;;  %s1645_s7 = inlined_call_operand.vmem [shape: f32[128,8], index: 7, kind: input, shape index: {}]   ;;  %s1646_s4 = inlined_call_operand.vmem [shape: f32[1,128], index: 4, kind: input, shape index: {}]   ;;  %s1647_s6 = inlined_call_operand.vmem [shape: f32[1,128], index: 6, kind: input, shape index: {}]   ;;  %s1648_s8 = inlined_call_operand.vmem [shape: f32[1,8], index: 8, kind: input, shape index: {}]   ;;  %s1649_s9 = inlined_call_operand.vmem [shape: f32[128,8], index: 9, kind: output, shape index: {}]  }
   0x1   :  { %v48_v0 = vld [vmem:[%s1640_s1] sm:$0xff]  ;;  %v33_v2 = vld [vmem:[%s1641_s0 + $0x8] sm:$0xff]  ;;  %v34_v3 = vld [vmem:[%s1641_s0 + $0x10] sm:$0xff] }
   0x2   :  { %v32_v1 = vld [vmem:[%s1641_s0] sm:$0xff]  ;;  %955 = vmatprep.subr.mxu0 %v48_v0  ;;  %v35_v4 = vld [vmem:[%s1641_s0 + $0x18] sm:$0xff]  ;;  %v267_v7 = vld [vmem:[%s1642_s3 + $0x8] sm:$0xff] }
   0x3   :  { %957 = vmatprep.mubr.msk.f32.mxu0 %vm56_vm0, %v32_v1  ;;  %956 = vmatpush3.msra.mxu0 %v48_v0  ;;  %v36_v5 = vld [vmem:[%s1641_s0 + $0x20] sm:$0xff]  ;;  %v268_v8 = vld [vmem:[%s1642_s3 + $0x10] sm:$0xff]  ;;  %v269_v9 = vld [vmem:[%s1642_s3 + $0x18] sm:$0xff] }
   0x4   :  { %958 = vmatmul.mubr.msk.f32.vlgmr.msra.gmra.mrb[0].mxu0 %vm56_vm0, %v33_v2  ;;  %v266_v6 = vld [vmem:[%s1642_s3] sm:$0xff]  ;;  %v1153_v11 = vpack.c.bf16 %v269_v9, %v268_v8  ;;  %v37_v12 = vld [vmem:[%s1641_s0 + $0x28] sm:$0xff]  ;;  %v38_v15 = vld [vmem:[%s1641_s0 + $0x30] sm:$0xff] }
   0x5   :  { %960 = vmatprep.mubr.msk.f32.mxu0 %vm56_vm0, %v34_v3  ;;  %v1149_v10 = vpack.c.bf16 %v267_v7, %v266_v6  ;;  %v270_v13 = vld [vmem:[%s1642_s3 + $0x20] sm:$0xff]  ;;  %v271_v14 = vld [vmem:[%s1642_s3 + $0x28] sm:$0xff]  ;;  %v39_v17 = vld [vmem:[%s1641_s0 + $0x38] sm:$0xff] }
   0x6   :  { %v1157_v16 = vpack.c.bf16 %v271_v14, %v270_v13  ;;  %v272_v18 = vld [vmem:[%s1642_s3 + $0x30] sm:$0xff]  ;;  %v273_v19 = vld [vmem:[%s1642_s3 + $0x38] sm:$0xff]  ;;  %v40_v20 = vld [vmem:[%s1641_s0 + $0x40] sm:$0xff] }
   0x7   :  { %1150 = vmatprep.subr.bf16.mxu1 %v1149_v10  ;;  %v1161_v21 = vpack.c.bf16 %v273_v19, %v272_v18  ;;  %v41_v22 = vld [vmem:[%s1641_s0 + $0x48] sm:$0xff]  ;;  %v274_v23 = vld [vmem:[%s1642_s3 + $0x40] sm:$0xff]  ;;  %v42_v25 = vld [vmem:[%s1641_s0 + $0x50] sm:$0xff] }
   0x8   :  { %961 = vmatmul.mubr.msk.f32.gmra.mrb[2].mxu0 %vm56_vm0, %v35_v4  ;;  %1152 = vmatpush3.bf16.msra.mxu1 %v1149_v10  ;;  %v275_v24 = vld [vmem:[%s1642_s3 + $0x48] sm:$0xff]  ;;  %v43_v27 = vld [vmem:[%s1641_s0 + $0x58] sm:$0xff]  ;;  %v276_v28 = vld [vmem:[%s1642_s3 + $0x50] sm:$0xff] }
   0x9   :  { %963 = vmatprep.mubr.msk.f32.mxu0 %vm56_vm0, %v36_v5  ;;  %1154 = vmatprep.subr.bf16.mxu1 %v1153_v11  ;;  %v1165_v26 = vpack.c.bf16 %v275_v24, %v274_v23  ;;  %v277_v29 = vld [vmem:[%s1642_s3 + $0x58] sm:$0xff]  ;;  %v44_v30 = vld [vmem:[%s1641_s0 + $0x60] sm:$0xff]  ;;  %v45_v32 = vld [vmem:[%s1641_s0 + $0x68] sm:$0xff] }
   0xa   :  { %v1169_v31 = vpack.c.bf16 %v277_v29, %v276_v28  ;;  %v278_v33 = vld [vmem:[%s1642_s3 + $0x60] sm:$0xff]  ;;  %v279_v34 = vld [vmem:[%s1642_s3 + $0x68] sm:$0xff]  ;;  %v46_v35 = vld [vmem:[%s1641_s0 + $0x70] sm:$0xff] }
   0xb   :  { %v1173_v36 = vpack.c.bf16 %v279_v34, %v278_v33  ;;  %v47_v37 = vld [vmem:[%s1641_s0 + $0x78] sm:$0xff]  ;;  %v280_v38 = vld [vmem:[%s1642_s3 + $0x70] sm:$0xff]  ;;  %v450_v41 = vld [vmem:[%s1643_s5] sm:$0xff] }
   0xc   :  { %964 = vmatmul.mubr.msk.f32.gmra.mrb[4].mxu0 %vm56_vm0, %v37_v12  ;;  %1156 = vmatpush3.bf16.msra.mxu1 %v1153_v11  ;;  %v281_v39 = vld [vmem:[%s1642_s3 + $0x78] sm:$0xff]  ;;  %v451_v42 = vld [vmem:[%s1643_s5 + $0x8] sm:$0xff]  ;;  %v452_v43 = vld [vmem:[%s1643_s5 + $0x10] sm:$0xff] }
   0xd   :  { %966 = vmatprep.mubr.msk.f32.mxu0 %vm56_vm0, %v38_v15  ;;  %1158 = vmatprep.subr.bf16.mxu1 %v1157_v16  ;;  %v1177_v40 = vpack.c.bf16 %v281_v39, %v280_v38  ;;  %v1181_v44 = vpack.c.bf16 %v451_v42, %v450_v41  ;;  %v453_v45 = vld [vmem:[%s1643_s5 + $0x18] sm:$0xff]  ;;  %v454_v47 = vld [vmem:[%s1643_s5 + $0x20] sm:$0xff]  ;;  %v455_v48 = vld [vmem:[%s1643_s5 + $0x28] sm:$0xff] }
   0xe   :  { %v1185_v46 = vpack.c.bf16 %v453_v45, %v452_v43  ;;  %v1189_v49 = vpack.c.bf16 %v455_v48, %v454_v47  ;;  %v456_v50 = vld [vmem:[%s1643_s5 + $0x30] sm:$0xff]  ;;  %v457_v51 = vld [vmem:[%s1643_s5 + $0x38] sm:$0xff]  ;;  %v458_v53 = vld [vmem:[%s1643_s5 + $0x40] sm:$0xff] }
   0xf   :  { %1182 = vmatprep.subr.bf16.mxu0 %v1181_v44  ;;  %v1193_v52 = vpack.c.bf16 %v457_v51, %v456_v50  ;;  %v459_v54 = vld [vmem:[%s1643_s5 + $0x48] sm:$0xff]  ;;  %v460_v56 = vld [vmem:[%s1643_s5 + $0x50] sm:$0xff]  ;;  %v461_v57 = vld [vmem:[%s1643_s5 + $0x58] sm:$0xff] }
  0x10   :  { %967 = vmatmul.mubr.msk.f32.gmra.mrb[6].mxu0 %vm56_vm0, %v39_v17  ;;  %1160 = vmatpush3.bf16.msra.mxu1 %v1157_v16  ;;  %v1197_v55 = vpack.c.bf16 %v459_v54, %v458_v53  ;;  %v1201_v58 = vpack.c.bf16 %v461_v57, %v460_v56  ;;  %v462_v59 = vld [vmem:[%s1643_s5 + $0x60] sm:$0xff]  ;;  %v463_v60 = vld [vmem:[%s1643_s5 + $0x68] sm:$0xff]  ;;  %v464_v47 = vld [vmem:[%s1643_s5 + $0x70] sm:$0xff] }
  0x11   :  { %969 = vmatprep.mubr.msk.f32.mxu0 %vm56_vm0, %v40_v20  ;;  %1162 = vmatprep.subr.bf16.mxu1 %v1161_v21  ;;  %v1205_v61 = vpack.c.bf16 %v463_v60, %v462_v59  ;;  %v822_v62 = vld [vmem:[%s1644_s2] ss:$0 sm:$0xff]  ;;  %v465_v48 = vld [vmem:[%s1643_s5 + $0x78] sm:$0xff]  ;;  %v635_v51 = vld [vmem:[%s1645_s7 + $0x8] sm:$0xff] }
  0x12   :  { %1184 = vmatpush3.bf16.msra.mxu0 %v1181_v44  ;;  %v634_v50 = vld [vmem:[%s1645_s7] sm:$0xff]  ;;  %v637_v54 = vld [vmem:[%s1645_s7 + $0x18] sm:$0xff]  ;;  %v639_v57 = vld [vmem:[%s1645_s7 + $0x28] sm:$0xff] }
  0x13   :  { %1186 = vmatprep.subr.bf16.mxu0 %v1185_v46  ;;  %v1213_v53 = vpack.c.bf16 %v635_v51, %v634_v50  ;;  %v638_v56 = vld [vmem:[%s1645_s7 + $0x20] sm:$0xff]  ;;  %v640_v59 = vld [vmem:[%s1645_s7 + $0x30] sm:$0xff]  ;;  %v641_v60 = vld [vmem:[%s1645_s7 + $0x38] sm:$0xff] }
  0x14   :  { %970 = vmatmul.mubr.msk.f32.gmra.mrb[8].mxu0 %vm56_vm0, %v41_v22  ;;  %1164 = vmatpush3.bf16.msra.mxu1 %v1161_v21 }
  0x15   :  { %972 = vmatprep.mubr.msk.f32.mxu0 %vm56_vm0, %v42_v25  ;;  %1166 = vmatprep.subr.bf16.mxu1 %v1165_v26 }
  0x16   :  { %1188 = vmatpush3.bf16.msra.mxu0 %v1185_v46 }
  0x17   :  { %1190 = vmatprep.subr.bf16.mxu0 %v1189_v49 }
  0x18   :  { %973 = vmatmul.mubr.msk.f32.gmra.mrb[10].mxu0 %vm56_vm0, %v43_v27  ;;  %1168 = vmatpush3.bf16.msra.mxu1 %v1165_v26 }
  0x19   :  { %975 = vmatprep.mubr.msk.f32.mxu0 %vm56_vm0, %v44_v30  ;;  %1170 = vmatprep.subr.bf16.mxu1 %v1169_v31 }
  0x1a   :  { %1192 = vmatpush3.bf16.msra.mxu0 %v1189_v49  ;;  %v1209_v49 = vpack.c.bf16 %v465_v48, %v464_v47 }
  0x1b   :  { %1194 = vmatprep.subr.bf16.mxu0 %v1193_v52 }
  0x1c   :  { %976 = vmatmul.mubr.msk.f32.gmra.mrb[12].mxu0 %vm56_vm0, %v45_v32  ;;  %1172 = vmatpush3.bf16.msra.mxu1 %v1169_v31 }
  0x1d   :  { %978 = vmatprep.mubr.msk.f32.mxu0 %vm56_vm0, %v46_v35  ;;  %1174 = vmatprep.subr.bf16.mxu1 %v1173_v36 }
  0x1e   :  { %1196 = vmatpush3.bf16.msra.mxu0 %v1193_v52  ;;  %v636_v52 = vld [vmem:[%s1645_s7 + $0x10] sm:$0xff] }
  0x1f   :  { %1198 = vmatprep.subr.bf16.mxu0 %v1197_v55 }
  0x20   :  { %979 = vmatmul.mubr.msk.f32.gmra.mrb[14].mxu0 %vm56_vm0, %v47_v37  ;;  %1176 = vmatpush3.bf16.msra.mxu1 %v1173_v36 }
  0x21   :  { %1178 = vmatprep.subr.bf16.mxu1 %v1177_v40 }
  0x22   :  { %1200 = vmatpush3.bf16.msra.mxu0 %v1197_v55  ;;  %v1217_v55 = vpack.c.bf16 %v637_v54, %v636_v52 }
  0x23   :  { %1202 = vmatprep.subr.bf16.mxu0 %v1201_v58 }
  0x24   :  { %1180 = vmatpush3.bf16.msra.mxu1 %v1177_v40 }
  0x25   :  { %1245 = vmatprep.subr.bf16.mxu1 %v1213_v53 }
  0x26   :  { %1204 = vmatpush3.bf16.msra.mxu0 %v1201_v58  ;;  %v1221_v58 = vpack.c.bf16 %v639_v57, %v638_v56  ;;  %v648_v56 = vld [vmem:[%s1645_s7 + $0x70] sm:$0xff]  ;;  %v649_v57 = vld [vmem:[%s1645_s7 + $0x78] sm:$0xff] }
  0x27   :  { %1206 = vmatprep.subr.bf16.mxu0 %v1205_v61 }
  0x2a   :  { %1208 = vmatpush3.bf16.msra.mxu0 %v1205_v61  ;;  %v1501_v61 = vpack.c.bf16 %v641_v60, %v640_v59  ;;  %v840_v59 = vld [vmem:[%s1647_s6] ss:$0 sm:$0xff] }
  0x2b   :  { %1210 = vmatprep.subr.bf16.mxu0 %v1209_v49 }
  0x2e   :  { %1212 = vmatpush3.bf16.msra.mxu0 %v1209_v49 }
  0x2f   :  { %1214 = vmatprep.subr.bf16.mxu0 %v1213_v53 }
  0xd7   :  { %v959_v63 = vpop.f32.mrb[0].mxu0 }
  0xd8   :  { %v177_v0 = vadd.f32 %v959_v63, %v822_v62  ;;  %v171_v1 = vpop.f32.mrb[1].mxu0  ;;  %v643_v63 = vld [vmem:[%s1645_s7 + $0x48] sm:$0xff] }
  0xd9   :  { %v172_v2 = vadd.f32 %v822_v62, %v171_v1  ;;  %v644_v1 = vld [vmem:[%s1645_s7 + $0x50] sm:$0xff] }
  0xda   :  { %v251_v5 = vmax.f32 %v177_v0, 0.0 }
  0xdb   :  { %v962_v3 = vpop.f32.mrb[2].mxu0  ;;  %v250_v4 = vmax.f32 %v172_v2, 0.0  ;;  %v645_v2 = vld [vmem:[%s1645_s7 + $0x58] sm:$0xff] }
  0xdc   :  { %v187_v6 = vadd.f32 %v962_v3, %v822_v62  ;;  %v181_v7 = vpop.f32.mrb[3].mxu0  ;;  %v1520_v3 = vpack.c.bf16 %v645_v2, %v644_v1 }
  0xdd   :  { %v182_v8 = vadd.f32 %v822_v62, %v181_v7  ;;  %1013 = vmatprep.mubr.f32.mxu1 %v250_v4  ;;  %v646_v4 = vld [vmem:[%s1645_s7 + $0x60] sm:$0xff] }
  0xde   :  { %1014 = vmatmul.mubr.f32.vlgmr.msra.gmra.mrb[0].mxu1 %v251_v5  ;;  %v253_v11 = vmax.f32 %v187_v6, 0.0  ;;  %v647_v5 = vld [vmem:[%s1645_s7 + $0x68] sm:$0xff]  ;;  %v1538_v7 = vld [vmem:[%s1646_s4] ss:$0 sm:$0xff] }
  0xdf   :  { %v252_v9 = vmax.f32 %v182_v8, 0.0  ;;  %v965_v10 = vpop.f32.mrb[4].mxu0  ;;  %1253 = vmatpush3.bf16.msra.mxu1 %v1213_v53  ;;  %v1530_v6 = vpack.c.bf16 %v647_v5, %v646_v4 }
  0xe0   :  { %v197_v12 = vadd.f32 %v965_v10, %v822_v62  ;;  %v191_v13 = vpop.f32.mrb[5].mxu0  ;;  %1246 = vmatprep.subr.bf16.mxu1 %v1217_v55 }
  0xe1   :  { %v192_v14 = vadd.f32 %v822_v62, %v191_v13  ;;  %1016 = vmatprep.mubr.f32.mxu1 %v252_v9 }
  0xe2   :  { %1017 = vmatmul.mubr.f32.gmra.mrb[2].mxu1 %v253_v11  ;;  %v255_v17 = vmax.f32 %v197_v12, 0.0 }
  0xe3   :  { %v254_v15 = vmax.f32 %v192_v14, 0.0  ;;  %v968_v16 = vpop.f32.mrb[6].mxu0  ;;  %1254 = vmatpush3.bf16.msra.mxu1 %v1217_v55 }
  0xe4   :  { %v207_v18 = vadd.f32 %v968_v16, %v822_v62  ;;  %v201_v19 = vpop.f32.mrb[7].mxu0  ;;  %1247 = vmatprep.subr.bf16.mxu1 %v1221_v58 }
  0xe5   :  { %v202_v20 = vadd.f32 %v822_v62, %v201_v19  ;;  %1019 = vmatprep.mubr.f32.mxu1 %v254_v15 }
  0xe6   :  { %1020 = vmatmul.mubr.f32.gmra.mrb[4].mxu1 %v255_v17  ;;  %v257_v23 = vmax.f32 %v207_v18, 0.0 }
  0xe7   :  { %v256_v21 = vmax.f32 %v202_v20, 0.0  ;;  %v971_v22 = vpop.f32.mrb[8].mxu0  ;;  %1255 = vmatpush3.bf16.msra.mxu1 %v1221_v58 }
  0xe8   :  { %v217_v24 = vadd.f32 %v971_v22, %v822_v62  ;;  %v211_v25 = vpop.f32.mrb[9].mxu0  ;;  %1248 = vmatprep.subr.bf16.mxu1 %v1501_v61 }
  0xe9   :  { %v212_v26 = vadd.f32 %v822_v62, %v211_v25  ;;  %1022 = vmatprep.mubr.f32.mxu1 %v256_v21 }
  0xea   :  { %1023 = vmatmul.mubr.f32.gmra.mrb[6].mxu1 %v257_v23  ;;  %v259_v29 = vmax.f32 %v217_v24, 0.0 }
  0xeb   :  { %v258_v27 = vmax.f32 %v212_v26, 0.0  ;;  %v974_v28 = vpop.f32.mrb[10].mxu0  ;;  %1256 = vmatpush3.bf16.msra.mxu1 %v1501_v61 }
  0xec   :  { %v227_v30 = vadd.f32 %v974_v28, %v822_v62  ;;  %v221_v31 = vpop.f32.mrb[11].mxu0 }
  0xed   :  { %v222_v32 = vadd.f32 %v822_v62, %v221_v31  ;;  %1025 = vmatprep.mubr.f32.mxu1 %v258_v27 }
  0xee   :  { %1026 = vmatmul.mubr.f32.gmra.mrb[8].mxu1 %v259_v29  ;;  %v261_v35 = vmax.f32 %v227_v30, 0.0 }
  0xef   :  { %v260_v33 = vmax.f32 %v222_v32, 0.0  ;;  %v977_v34 = vpop.f32.mrb[12].mxu0 }
  0xf0   :  { %v237_v36 = vadd.f32 %v977_v34, %v822_v62  ;;  %v231_v37 = vpop.f32.mrb[13].mxu0 }
  0xf1   :  { %v232_v38 = vadd.f32 %v822_v62, %v231_v37  ;;  %1028 = vmatprep.mubr.f32.mxu1 %v260_v33 }
  0xf2   :  { %1029 = vmatmul.mubr.f32.gmra.mrb[10].mxu1 %v261_v35  ;;  %v263_v41 = vmax.f32 %v237_v36, 0.0 }
  0xf3   :  { %v262_v39 = vmax.f32 %v232_v38, 0.0  ;;  %v980_v40 = vpop.f32.mrb[14].mxu0 }
  0xf4   :  { %v247_v42 = vadd.f32 %v980_v40, %v822_v62  ;;  %v241_v43 = vpop.f32.mrb[15].mxu0 }
  0xf5   :  { %v242_v44 = vadd.f32 %v822_v62, %v241_v43  ;;  %1031 = vmatprep.mubr.f32.mxu1 %v262_v39  ;;  %v642_v62 = vld [vmem:[%s1645_s7 + $0x40] sm:$0xff] }
  0xf6   :  { %1032 = vmatmul.mubr.f32.gmra.mrb[12].mxu1 %v263_v41  ;;  %v265_v46 = vmax.f32 %v247_v42, 0.0  ;;  %v1510_v0 = vpack.c.bf16 %v643_v63, %v642_v62 }
  0xf7   :  { %v264_v45 = vmax.f32 %v242_v44, 0.0 }
  0xf8   :  { %1249 = vmatprep.subr.bf16.mxu1 %v1510_v0 }
  0xf9   :  { %1034 = vmatprep.mubr.f32.mxu1 %v264_v45  ;;  %1257 = vmatpush3.bf16.msra.mxu1 %v1510_v0 }
  0xfa   :  { %1035 = vmatmul.mubr.f32.gmra.mrb[14].mxu1 %v265_v46  ;;  %1250 = vmatprep.subr.bf16.mxu1 %v1520_v3 }
  0xfd   :  { %1258 = vmatpush3.bf16.msra.mxu1 %v1520_v3 }
  0xfe   :  { %1251 = vmatprep.subr.bf16.mxu1 %v1530_v6 }
 0x101   :  { %1259 = vmatpush3.bf16.msra.mxu1 %v1530_v6 }
 0x1b1   :  { %v1015_v8 = vpop.f32.mrb[0].mxu1 }
 0x1b2   :  { %v361_v9 = vadd.f32 %v1015_v8, %v1538_v7  ;;  %v355_v10 = vpop.f32.mrb[1].mxu1 }
 0x1b3   :  { %v356_v11 = vadd.f32 %v1538_v7, %v355_v10 }
 0x1b4   :  { %v435_v14 = vmax.f32 %v361_v9, 0.0 }
 0x1b5   :  { %v434_v12 = vmax.f32 %v356_v11, 0.0  ;;  %v1018_v13 = vpop.f32.mrb[2].mxu1 }
 0x1b6   :  { %v371_v15 = vadd.f32 %v1018_v13, %v1538_v7  ;;  %v365_v16 = vpop.f32.mrb[3].mxu1 }
 0x1b7   :  { %v366_v17 = vadd.f32 %v1538_v7, %v365_v16  ;;  %1069 = vmatprep.mubr.f32.mxu0 %v434_v12 }
 0x1b8   :  { %1070 = vmatmul.mubr.f32.vlgmr.msra.gmra.mrb[16].mxu0 %v435_v14  ;;  %v437_v20 = vmax.f32 %v371_v15, 0.0 }
 0x1b9   :  { %v436_v18 = vmax.f32 %v366_v17, 0.0  ;;  %v1021_v19 = vpop.f32.mrb[4].mxu1  ;;  %1216 = vmatpush3.bf16.msra.mxu0 %v1213_v53 }
 0x1ba   :  { %v381_v21 = vadd.f32 %v1021_v19, %v1538_v7  ;;  %v375_v22 = vpop.f32.mrb[5].mxu1  ;;  %1218 = vmatprep.subr.bf16.mxu0 %v1217_v55 }
 0x1bb   :  { %v376_v23 = vadd.f32 %v1538_v7, %v375_v22  ;;  %1072 = vmatprep.mubr.f32.mxu0 %v436_v18 }
 0x1bc   :  { %1073 = vmatmul.mubr.f32.gmra.mrb[18].mxu0 %v437_v20  ;;  %v439_v26 = vmax.f32 %v381_v21, 0.0 }
 0x1bd   :  { %v438_v24 = vmax.f32 %v376_v23, 0.0  ;;  %v1024_v25 = vpop.f32.mrb[6].mxu1  ;;  %1220 = vmatpush3.bf16.msra.mxu0 %v1217_v55 }
 0x1be   :  { %v391_v27 = vadd.f32 %v1024_v25, %v1538_v7  ;;  %v385_v28 = vpop.f32.mrb[7].mxu1  ;;  %1222 = vmatprep.subr.bf16.mxu0 %v1221_v58 }
 0x1bf   :  { %v386_v29 = vadd.f32 %v1538_v7, %v385_v28  ;;  %1075 = vmatprep.mubr.f32.mxu0 %v438_v24 }
 0x1c0   :  { %1076 = vmatmul.mubr.f32.gmra.mrb[20].mxu0 %v439_v26  ;;  %v441_v32 = vmax.f32 %v391_v27, 0.0 }
 0x1c1   :  { %v440_v30 = vmax.f32 %v386_v29, 0.0  ;;  %v1027_v31 = vpop.f32.mrb[8].mxu1  ;;  %1224 = vmatpush3.bf16.msra.mxu0 %v1221_v58  ;;  %v1241_v58 = vpack.c.bf16 %v649_v57, %v648_v56 }
 0x1c2   :  { %v401_v33 = vadd.f32 %v1027_v31, %v1538_v7  ;;  %v395_v34 = vpop.f32.mrb[9].mxu1  ;;  %1226 = vmatprep.subr.bf16.mxu0 %v1501_v61 }
 0x1c3   :  { %v396_v35 = vadd.f32 %v1538_v7, %v395_v34  ;;  %1078 = vmatprep.mubr.f32.mxu0 %v440_v30  ;;  %1252 = vmatprep.subr.bf16.mxu1 %v1241_v58 }
 0x1c4   :  { %1079 = vmatmul.mubr.f32.gmra.mrb[22].mxu0 %v441_v32  ;;  %v443_v38 = vmax.f32 %v401_v33, 0.0  ;;  %1260 = vmatpush3.bf16.msra.mxu1 %v1241_v58 }
 0x1c5   :  { %v442_v36 = vmax.f32 %v396_v35, 0.0  ;;  %v1030_v37 = vpop.f32.mrb[10].mxu1  ;;  %1228 = vmatpush3.bf16.msra.mxu0 %v1501_v61 }
 0x1c6   :  { %v411_v39 = vadd.f32 %v1030_v37, %v1538_v7  ;;  %v405_v40 = vpop.f32.mrb[11].mxu1  ;;  %1230 = vmatprep.subr.bf16.mxu0 %v1510_v0 }
 0x1c7   :  { %v406_v41 = vadd.f32 %v1538_v7, %v405_v40  ;;  %1081 = vmatprep.mubr.f32.mxu0 %v442_v36 }
 0x1c8   :  { %1082 = vmatmul.mubr.f32.gmra.mrb[24].mxu0 %v443_v38  ;;  %v445_v44 = vmax.f32 %v411_v39, 0.0 }
 0x1c9   :  { %v444_v42 = vmax.f32 %v406_v41, 0.0  ;;  %v1033_v43 = vpop.f32.mrb[12].mxu1  ;;  %1232 = vmatpush3.bf16.msra.mxu0 %v1510_v0 }
 0x1ca   :  { %v421_v45 = vadd.f32 %v1033_v43, %v1538_v7  ;;  %v415_v46 = vpop.f32.mrb[13].mxu1  ;;  %1234 = vmatprep.subr.bf16.mxu0 %v1520_v3 }
 0x1cb   :  { %v416_v47 = vadd.f32 %v1538_v7, %v415_v46  ;;  %1084 = vmatprep.mubr.f32.mxu0 %v444_v42 }
 0x1cc   :  { %1085 = vmatmul.mubr.f32.gmra.mrb[26].mxu0 %v445_v44  ;;  %v447_v50 = vmax.f32 %v421_v45, 0.0  ;;  %v841_v44 = vld [vmem:[%s1648_s8] ss:$0 sm:$0xff] }
 0x1cd   :  { %v446_v48 = vmax.f32 %v416_v47, 0.0  ;;  %v1036_v49 = vpop.f32.mrb[14].mxu1  ;;  %1236 = vmatpush3.bf16.msra.mxu0 %v1520_v3 }
 0x1ce   :  { %v431_v51 = vadd.f32 %v1036_v49, %v1538_v7  ;;  %v425_v52 = vpop.f32.mrb[15].mxu1  ;;  %1238 = vmatprep.subr.bf16.mxu0 %v1530_v6 }
 0x1cf   :  { %v426_v53 = vadd.f32 %v1538_v7, %v425_v52  ;;  %1087 = vmatprep.mubr.f32.mxu0 %v446_v48 }
 0x1d0   :  { %1088 = vmatmul.mubr.f32.gmra.mrb[28].mxu0 %v447_v50  ;;  %v449_v55 = vmax.f32 %v431_v51, 0.0 }
 0x1d1   :  { %v448_v54 = vmax.f32 %v426_v53, 0.0  ;;  %1240 = vmatpush3.bf16.msra.mxu0 %v1530_v6 }
 0x1d2   :  { %1242 = vmatprep.subr.bf16.mxu0 %v1241_v58 }
 0x1d3   :  { %1090 = vmatprep.mubr.f32.mxu0 %v448_v54 }
 0x1d4   :  { %1091 = vmatmul.mubr.f32.gmra.mrb[30].mxu0 %v449_v55 }
 0x1d5   :  { %1244 = vmatpush3.bf16.msra.mxu0 %v1241_v58 }
 0x28b   :  { %v1071_v60 = vpop.f32.mrb[16].mxu0 }
 0x28c   :  { %v545_v61 = vadd.f32 %v1071_v60, %v840_v59  ;;  %v539_v62 = vpop.f32.mrb[17].mxu0 }
 0x28d   :  { %v540_v63 = vadd.f32 %v840_v59, %v539_v62 }
 0x28e   :  { %v619_v2 = vmax.f32 %v545_v61, 0.0 }
 0x28f   :  { %v618_v0 = vmax.f32 %v540_v63, 0.0  ;;  %v1074_v1 = vpop.f32.mrb[18].mxu0 }
 0x290   :  { %v555_v3 = vadd.f32 %v1074_v1, %v840_v59  ;;  %v549_v4 = vpop.f32.mrb[19].mxu0 }
 0x291   :  { %v550_v5 = vadd.f32 %v840_v59, %v549_v4  ;;  %1125 = vmatprep.mubr.f32.mxu0 %v618_v0 }
 0x292   :  { %1126 = vmatmul.mubr.f32.vlgmr.msra.gmra.mrb[32].mxu0 %v619_v2  ;;  %v621_v8 = vmax.f32 %v555_v3, 0.0 }
 0x293   :  { %v620_v6 = vmax.f32 %v550_v5, 0.0  ;;  %v1077_v7 = vpop.f32.mrb[20].mxu0 }
 0x294   :  { %v565_v9 = vadd.f32 %v1077_v7, %v840_v59  ;;  %v559_v10 = vpop.f32.mrb[21].mxu0 }
 0x295   :  { %v560_v11 = vadd.f32 %v840_v59, %v559_v10  ;;  %1128 = vmatprep.mubr.f32.mxu0 %v620_v6 }
 0x296   :  { %1129 = vmatmul.mubr.f32.gmra.mrb[34].mxu0 %v621_v8  ;;  %v623_v14 = vmax.f32 %v565_v9, 0.0 }
 0x297   :  { %v622_v12 = vmax.f32 %v560_v11, 0.0  ;;  %v1080_v13 = vpop.f32.mrb[22].mxu0 }
 0x298   :  { %v575_v15 = vadd.f32 %v1080_v13, %v840_v59  ;;  %v569_v16 = vpop.f32.mrb[23].mxu0 }
 0x299   :  { %v570_v17 = vadd.f32 %v840_v59, %v569_v16  ;;  %1131 = vmatprep.mubr.f32.mxu0 %v622_v12 }
 0x29a   :  { %1132 = vmatmul.mubr.f32.gmra.mrb[36].mxu0 %v623_v14  ;;  %v625_v20 = vmax.f32 %v575_v15, 0.0 }
 0x29b   :  { %v624_v18 = vmax.f32 %v570_v17, 0.0  ;;  %v1083_v19 = vpop.f32.mrb[24].mxu0 }
 0x29c   :  { %v585_v21 = vadd.f32 %v1083_v19, %v840_v59  ;;  %v579_v22 = vpop.f32.mrb[25].mxu0 }
 0x29d   :  { %v580_v23 = vadd.f32 %v840_v59, %v579_v22  ;;  %1134 = vmatprep.mubr.f32.mxu1 %v624_v18 }
 0x29e   :  { %1135 = vmatmul.mubr.f32.vlgmr.msra.gmra.mrb[16].mxu1 %v625_v20  ;;  %v627_v26 = vmax.f32 %v585_v21, 0.0 }
 0x29f   :  { %v626_v24 = vmax.f32 %v580_v23, 0.0  ;;  %v1086_v25 = vpop.f32.mrb[26].mxu0 }
 0x2a0   :  { %v595_v27 = vadd.f32 %v1086_v25, %v840_v59  ;;  %v589_v28 = vpop.f32.mrb[27].mxu0 }
 0x2a1   :  { %v590_v29 = vadd.f32 %v840_v59, %v589_v28  ;;  %1137 = vmatprep.mubr.f32.mxu1 %v626_v24 }
 0x2a2   :  { %1138 = vmatmul.mubr.f32.gmra.mrb[18].mxu1 %v627_v26  ;;  %v629_v32 = vmax.f32 %v595_v27, 0.0 }
 0x2a3   :  { %v628_v30 = vmax.f32 %v590_v29, 0.0  ;;  %v1089_v31 = vpop.f32.mrb[28].mxu0 }
 0x2a4   :  { %v605_v33 = vadd.f32 %v1089_v31, %v840_v59  ;;  %v599_v34 = vpop.f32.mrb[29].mxu0 }
 0x2a5   :  { %v600_v35 = vadd.f32 %v840_v59, %v599_v34  ;;  %1140 = vmatprep.mubr.f32.mxu1 %v628_v30 }
 0x2a6   :  { %1141 = vmatmul.mubr.f32.gmra.mrb[20].mxu1 %v629_v32  ;;  %v631_v38 = vmax.f32 %v605_v33, 0.0 }
 0x2a7   :  { %v630_v36 = vmax.f32 %v600_v35, 0.0  ;;  %v1092_v37 = vpop.f32.mrb[30].mxu0 }
 0x2a8   :  { %v615_v39 = vadd.f32 %v1092_v37, %v840_v59  ;;  %v609_v40 = vpop.f32.mrb[31].mxu0 }
 0x2a9   :  { %v610_v41 = vadd.f32 %v840_v59, %v609_v40  ;;  %1143 = vmatprep.mubr.f32.mxu1 %v630_v36 }
 0x2aa   :  { %1144 = vmatmul.mubr.f32.gmra.mrb[22].mxu1 %v631_v38  ;;  %v633_v43 = vmax.f32 %v615_v39, 0.0 }
 0x2ab   :  { %v632_v42 = vmax.f32 %v610_v41, 0.0 }
 0x2ad   :  { %1146 = vmatprep.mubr.f32.mxu1 %v632_v42 }
 0x2ae   :  { %1147 = vmatmul.mubr.f32.gmra.mrb[24].mxu1 %v633_v43 }
 0x365   :  { %v1127_v45 = vpop.f32.mrb[32].mxu0 }
 0x366   :  { %v729_v46 = vadd.f32 %v1127_v45, %v841_v44  ;;  %v723_v47 = vpop.f32.mrb[33].mxu0 }
 0x367   :  { %v724_v48 = vadd.f32 %v841_v44, %v723_v47 }
 0x368   :  { %803 = vst.msk [vmem:[%s1649_s9 + $0x8] sm:$0xff] %vm56_vm0, %v729_v46 }
 0x369   :  { %802 = vst.msk [vmem:[%s1649_s9] sm:$0xff] %vm56_vm0, %v724_v48  ;;  %v1130_v49 = vpop.f32.mrb[34].mxu0 }
 0x36a   :  { %v739_v50 = vadd.f32 %v1130_v49, %v841_v44  ;;  %v733_v51 = vpop.f32.mrb[35].mxu0 }
 0x36b   :  { %v734_v52 = vadd.f32 %v841_v44, %v733_v51 }
 0x36c   :  { %805 = vst.msk [vmem:[%s1649_s9 + $0x18] sm:$0xff] %vm56_vm0, %v739_v50 }
 0x36d   :  { %804 = vst.msk [vmem:[%s1649_s9 + $0x10] sm:$0xff] %vm56_vm0, %v734_v52  ;;  %v1133_v53 = vpop.f32.mrb[36].mxu0 }
 0x36e   :  { %v749_v54 = vadd.f32 %v1133_v53, %v841_v44  ;;  %v743_v55 = vpop.f32.mrb[37].mxu0 }
 0x36f   :  { %v744_v56 = vadd.f32 %v841_v44, %v743_v55 }
 0x370   :  { %807 = vst.msk [vmem:[%s1649_s9 + $0x28] sm:$0xff] %vm56_vm0, %v749_v54 }
 0x371   :  { %806 = vst.msk [vmem:[%s1649_s9 + $0x20] sm:$0xff] %vm56_vm0, %v744_v56  ;;  %v1136_v57 = vpop.f32.mrb[16].mxu1 }
 0x372   :  { %v759_v58 = vadd.f32 %v1136_v57, %v841_v44  ;;  %v753_v59 = vpop.f32.mrb[17].mxu1 }
 0x373   :  { %v754_v60 = vadd.f32 %v841_v44, %v753_v59 }
 0x374   :  { %809 = vst.msk [vmem:[%s1649_s9 + $0x38] sm:$0xff] %vm56_vm0, %v759_v58 }
 0x375   :  { %808 = vst.msk [vmem:[%s1649_s9 + $0x30] sm:$0xff] %vm56_vm0, %v754_v60  ;;  %v1139_v61 = vpop.f32.mrb[18].mxu1 }
 0x376   :  { %v769_v62 = vadd.f32 %v1139_v61, %v841_v44  ;;  %v763_v63 = vpop.f32.mrb[19].mxu1 }
 0x377   :  { %v764_v0 = vadd.f32 %v841_v44, %v763_v63 }
 0x378   :  { %811 = vst.msk [vmem:[%s1649_s9 + $0x48] sm:$0xff] %vm56_vm0, %v769_v62 }
 0x379   :  { %810 = vst.msk [vmem:[%s1649_s9 + $0x40] sm:$0xff] %vm56_vm0, %v764_v0  ;;  %v1142_v1 = vpop.f32.mrb[20].mxu1 }
 0x37a   :  { %v779_v2 = vadd.f32 %v1142_v1, %v841_v44  ;;  %v773_v3 = vpop.f32.mrb[21].mxu1 }
 0x37b   :  { %v774_v4 = vadd.f32 %v841_v44, %v773_v3 }
 0x37c   :  { %813 = vst.msk [vmem:[%s1649_s9 + $0x58] sm:$0xff] %vm56_vm0, %v779_v2 }
 0x37d   :  { %812 = vst.msk [vmem:[%s1649_s9 + $0x50] sm:$0xff] %vm56_vm0, %v774_v4  ;;  %v1145_v5 = vpop.f32.mrb[22].mxu1 }
 0x37e   :  { %v789_v6 = vadd.f32 %v1145_v5, %v841_v44  ;;  %v783_v7 = vpop.f32.mrb[23].mxu1 }
 0x37f   :  { %v784_v8 = vadd.f32 %v841_v44, %v783_v7 }
 0x380   :  { %815 = vst.msk [vmem:[%s1649_s9 + $0x68] sm:$0xff] %vm56_vm0, %v789_v6 }
 0x381   :  { %814 = vst.msk [vmem:[%s1649_s9 + $0x60] sm:$0xff] %vm56_vm0, %v784_v8  ;;  %v1148_v9 = vpop.f32.mrb[24].mxu1 }
 0x382   :  { %v799_v10 = vadd.f32 %v1148_v9, %v841_v44  ;;  %v793_v11 = vpop.f32.mrb[25].mxu1 }
 0x383   :  { %v794_v12 = vadd.f32 %v841_v44, %v793_v11 }
 0x384   :  { %817 = vst.msk [vmem:[%s1649_s9 + $0x78] sm:$0xff] %vm56_vm0, %v799_v10 }
 0x385   :  { %816 = vst.msk [vmem:[%s1649_s9 + $0x70] sm:$0xff] %vm56_vm0, %v794_v12 }

</bundles_post_ra>
